<compile_context>
chip_gen: v5e
topology: v5e:2x2
jax: 0.10.0
libtpu: 0.0.40
codegen_flags: <defaults>
</compile_context>

<pallas_src>
import jax
import jax.numpy as jnp
from jax.experimental import pallas as pl
from jax.experimental.pallas import tpu as pltpu

G = -9.81               # gravitational constant baked into the module (self.g)
HALF_G = 0.5 * G


def _round_up(x, m):
    return ((x + m - 1) // m) * m


def parabola_kernel(w_ref, b_ref, t_ref, out_ref):
    # w_ref, b_ref: (3,) f32 in SMEM ([wx,wy,wz], [bx,by,bz])
    # t_ref:  (block_rows, 128) f32 in VMEM (lane-dense time samples)
    # out_ref: (3, block_rows, 128) f32 in VMEM (SoA: 0=x, 1=y, 2=z)
    t = t_ref[...]
    out_ref[0] = t * w_ref[0] + b_ref[0]
    out_ref[1] = t * w_ref[1] + b_ref[1]
    # Factored FMA form of  t*wz + bz + 0.5*g*t**2
    out_ref[2] = t * (w_ref[2] + HALF_G * t) + b_ref[2]


def parabola_forward_soa(t, w, b, *, max_block_rows=2048):
    """Pallas fast path. Returns SoA (3, N) float32: row 0=x, 1=y, 2=z.

    t: (N,) or (N,1); w, b: (3,) = [wx,wy,wz], [bx,by,bz].
    """
    t_flat = jnp.asarray(t, jnp.float32).reshape(-1)
    N = t_flat.shape[0]
    w = jnp.asarray(w, jnp.float32).reshape(3)
    b = jnp.asarray(b, jnp.float32).reshape(3)

    # Lane-dense view: N samples -> (rows, 128).  Only the final partial
    # 128-lane row is padded (<=127 elems); for 128-aligned N this is a free
    # metadata reshape (no extra HBM pass over t).
    rows = pl.cdiv(N, 128)
    n_pad = rows * 128
    if n_pad != N:
        t_flat = jnp.pad(t_flat, (0, n_pad - N))
    t2d = t_flat.reshape(rows, 128)

    # Tile height: 2048 rows -> ~8 MiB double-buffered working set (fits the
    # default scoped VMEM on v5e/v6e/v7x); guarantee >=2 grid steps whenever
    # rows permit so the writeback of tile i-1 overlaps the prefetch of i+1.
    # (On v7x, 4096-row tiles are also viable if vmem_limit_bytes is raised.)
    if rows <= 8:
        block_rows = rows                                     # single full-dim tile
    else:
        block_rows = min(max_block_rows,
                         max(8, _round_up(pl.cdiv(rows, 2), 8)))
    grid = (pl.cdiv(rows, block_rows),)     # ragged last tile: Pallas masks writeback

    out = pl.pallas_call(
        parabola_kernel,
        out_shape=jax.ShapeDtypeStruct((3, rows, 128), jnp.float32),
        grid=grid,
        in_specs=[
            pl.BlockSpec(memory_space=pltpu.MemorySpace.SMEM),   # w (3,)
            pl.BlockSpec(memory_space=pltpu.MemorySpace.SMEM),   # b (3,)
            pl.BlockSpec((block_rows, 128), lambda i: (i, 0)),   # t tile
        ],
        out_specs=pl.BlockSpec((3, block_rows, 128), lambda i: (0, i, 0)),
        # TODO(synk): on v7x verify ("parallel",) actually shards the row axis
        # across both TensorCores; if not, switch to pltpu.CORE_PARALLEL.
        compiler_params=pltpu.CompilerParams(
            dimension_semantics=("parallel",)),
    )(w, b, t2d)

    out = out.reshape(3, n_pad)        # free: contiguous reshape
    if n_pad != N:
        out = out[:, :N]               # drop <=127 padded samples (fuses downstream)
    return out


def parabola_forward_reference(t, w, b):
    """Pure-JAX reference (also the small/medium-batch fast path). Returns (N, 3)."""
    t = jnp.asarray(t, jnp.float32).reshape(-1, 1)
    w = jnp.asarray(w, jnp.float32).reshape(1, 3)
    b = jnp.asarray(b, jnp.float32).reshape(1, 3)
    lin = t * w + b
    return lin.at[:, 2:3].add(HALF_G * t * t)


def parabola_forward(t, w, b, *, min_pallas_batch=32768):
    """Module-parity output (N, 3).

    Small/medium batches take the fused pure-JAX path (launch + layout
    overhead dominates below tens of thousands of samples).  Large batches
    take the Pallas SoA kernel; the (3,N)->(N,3) transpose is materialized
    only here because the original module returns (N, 3) — prefer
    parabola_forward_soa when the consumer can take SoA.
    """
    n = t.shape[0]
    if n < min_pallas_batch:
        return parabola_forward_reference(t, w, b)
    return parabola_forward_soa(t, w, b).T


if __name__ == "__main__":
    key = jax.random.PRNGKey(0)
    k_t, k_w, k_b = jax.random.split(key, 3)

    # Parameter init mimicking nn.Linear(1,1): uniform in [-1, 1] (fan_in=1).
    w = jax.random.uniform(k_w, (3,), jnp.float32, minval=-1.0, maxval=1.0)
    b = jax.random.uniform(k_b, (3,), jnp.float32, minval=-1.0, maxval=1.0)

    soa_fn = jax.jit(parabola_forward_soa)

    # Small shapes exercising: single-tile (N=300), multi-tile grid with a
    # ragged last tile (N=2500), and exactly 128-aligned zero-pad (N=1024).
    for n in (300, 2500, 1024):
        # Time inputs, shape (N, 1) like `t = data[:, 3].unsqueeze(1)`.
        t = jax.random.uniform(k_t, (n, 1), jnp.float32, minval=0.0, maxval=2.0)

        out_soa = jax.block_until_ready(soa_fn(t, w, b))        # (3, N) SoA
        ref = parabola_forward_reference(t, w, b)               # (N, 3)

        assert out_soa.shape == (3, n), out_soa.shape
        assert jnp.allclose(out_soa, ref.T, atol=1e-5, rtol=1e-5)

        # Module-parity (N, 3) output, materialized only when required.
        out_aos = jax.block_until_ready(out_soa.T)
        assert out_aos.shape == (n, 3), out_aos.shape
        assert jnp.allclose(out_aos, ref, atol=1e-5, rtol=1e-5)

    print("KERNEL_OK")
</pallas_src>

<mosaic_0001>
module attributes {stable_mosaic.version = 11 : i64} {
  func.func @parabola_kernel(%arg0: i32, %arg1: memref<3xf32, #tpu.memory_space<smem>>, %arg2: memref<3xf32, #tpu.memory_space<smem>>, %arg3: memref<3x128xf32, #tpu.memory_space<vmem>>, %arg4: memref<3x3x128xf32, #tpu.memory_space<vmem>>) attributes {dimension_semantics = [#tpu.dimension_semantics<parallel>], iteration_bounds = array<i64: 1>, scalar_prefetch = 0 : i64, scratch_operands = 0 : i64, tpu.core_type = #tpu.core_type<tc>, window_params = [{transform_indices = @transform_0, window_bounds = array<i64: 3>}, {transform_indices = @transform_1, window_bounds = array<i64: 3>}, {transform_indices = @transform_2, window_bounds = array<i64: 3, 128>}, {transform_indices = @transform_3, window_bounds = array<i64: 3, 3, 128>}]} {
    %c0 = arith.constant 0 : index
    %c0_0 = arith.constant 0 : index
    %0 = vector.load %arg3[%c0, %c0_0] : memref<3x128xf32, #tpu.memory_space<vmem>>, vector<3x128xf32>
    %c0_1 = arith.constant 0 : index
    %1 = memref.load %arg1[%c0_1] : memref<3xf32, #tpu.memory_space<smem>>
    %2 = vector.broadcast %1 : f32 to vector<3x128xf32>
    %3 = arith.mulf %0, %2 : vector<3x128xf32>
    %c0_2 = arith.constant 0 : index
    %4 = memref.load %arg2[%c0_2] : memref<3xf32, #tpu.memory_space<smem>>
    %5 = vector.broadcast %4 : f32 to vector<3x128xf32>
    %6 = arith.addf %3, %5 : vector<3x128xf32>
    %c0_3 = arith.constant 0 : index
    %c0_4 = arith.constant 0 : index
    %c0_5 = arith.constant 0 : index
    %7 = vector.load %arg4[%c0_3, %c0_4, %c0_5] : memref<3x3x128xf32, #tpu.memory_space<vmem>>, vector<1x3x128xf32>
    %8 = vector.shape_cast %7 : vector<1x3x128xf32> to vector<3x128xf32>
    %9 = vector.shape_cast %6 : vector<3x128xf32> to vector<1x3x128xf32>
    tpu.vector_store %arg4[%c0_3, %c0_4, %c0_5], %9 {strides = array<i32>} : memref<3x3x128xf32, #tpu.memory_space<vmem>>, vector<1x3x128xf32>,
    %c1 = arith.constant 1 : index
    %10 = memref.load %arg1[%c1] : memref<3xf32, #tpu.memory_space<smem>>
    %11 = vector.broadcast %10 : f32 to vector<3x128xf32>
    %12 = arith.mulf %0, %11 : vector<3x128xf32>
    %c1_6 = arith.constant 1 : index
    %13 = memref.load %arg2[%c1_6] : memref<3xf32, #tpu.memory_space<smem>>
    %14 = vector.broadcast %13 : f32 to vector<3x128xf32>
    %15 = arith.addf %12, %14 : vector<3x128xf32>
    %c1_7 = arith.constant 1 : index
    %c0_8 = arith.constant 0 : index
    %c0_9 = arith.constant 0 : index
    %16 = vector.load %arg4[%c1_7, %c0_8, %c0_9] : memref<3x3x128xf32, #tpu.memory_space<vmem>>, vector<1x3x128xf32>
    %17 = vector.shape_cast %16 : vector<1x3x128xf32> to vector<3x128xf32>
    %18 = vector.shape_cast %15 : vector<3x128xf32> to vector<1x3x128xf32>
    tpu.vector_store %arg4[%c1_7, %c0_8, %c0_9], %18 {strides = array<i32>} : memref<3x3x128xf32, #tpu.memory_space<vmem>>, vector<1x3x128xf32>,
    %c2 = arith.constant 2 : index
    %19 = memref.load %arg1[%c2] : memref<3xf32, #tpu.memory_space<smem>>
    %cst = arith.constant -4.905000e+00 : f32
    %20 = vector.broadcast %cst : f32 to vector<3x128xf32>
    %21 = arith.mulf %20, %0 : vector<3x128xf32>
    %22 = vector.broadcast %19 : f32 to vector<3x128xf32>
    %23 = arith.addf %22, %21 : vector<3x128xf32>
    %24 = arith.mulf %0, %23 : vector<3x128xf32>
    %c2_10 = arith.constant 2 : index
    %25 = memref.load %arg2[%c2_10] : memref<3xf32, #tpu.memory_space<smem>>
    %26 = vector.broadcast %25 : f32 to vector<3x128xf32>
    %27 = arith.addf %24, %26 : vector<3x128xf32>
    %c2_11 = arith.constant 2 : index
    %c0_12 = arith.constant 0 : index
    %c0_13 = arith.constant 0 : index
    %28 = vector.load %arg4[%c2_11, %c0_12, %c0_13] : memref<3x3x128xf32, #tpu.memory_space<vmem>>, vector<1x3x128xf32>
    %29 = vector.shape_cast %28 : vector<1x3x128xf32> to vector<3x128xf32>
    %30 = vector.shape_cast %27 : vector<3x128xf32> to vector<1x3x128xf32>
    tpu.vector_store %arg4[%c2_11, %c0_12, %c0_13], %30 {strides = array<i32>} : memref<3x3x128xf32, #tpu.memory_space<vmem>>, vector<1x3x128xf32>,
    return
  }
  func.func @transform_0(%arg0: i32) -> i32 {
    %c0_i32 = arith.constant 0 : i32
    %c0_i32_0 = arith.constant 0 : i32
    return %c0_i32 : i32
  }
  func.func @transform_1(%arg0: i32) -> i32 {
    %c0_i32 = arith.constant 0 : i32
    %c0_i32_0 = arith.constant 0 : i32
    return %c0_i32 : i32
  }
  func.func @transform_2(%arg0: i32) -> (i32, i32) {
    %c0_i32 = arith.constant 0 : i32
    %c0_i32_0 = arith.constant 0 : i32
    return %arg0, %c0_i32 : i32, i32
  }
  func.func @transform_3(%arg0: i32) -> (i32, i32, i32) {
    %c0_i32 = arith.constant 0 : i32
    %c0_i32_0 = arith.constant 0 : i32
    %c0_i32_1 = arith.constant 0 : i32
    return %c0_i32, %arg0, %c0_i32_0 : i32, i32, i32
  }
}

</mosaic_0001>

<bundles_post_ra>
// kernel: parabola_forward_soa.1
= control target key start
LH: loop header
LB: loop body
LE: loop exit
PB: predicated region body
PF: predicated region fallthrough
CT: control target
= control target key end

     0   :  { %8 = vsyncpa [#allocation3], 0  ;;  %s147_s0 = inlined_call_operand.vmem [shape: f32[3], index: 0, kind: input, shape index: {}]   ;;  %s148_s1 = inlined_call_operand.vmem [shape: f32[3], index: 1, kind: input, shape index: {}]   ;;  %s149_s2 = inlined_call_operand.vmem [shape: f32[3,128], index: 2, kind: input, shape index: {}]   ;;  %s150_s3 = inlined_call_operand.vmem [shape: f32[3,3,128], index: 3, kind: output, shape index: {}]  }
   0x1   :  { %s15_s14 = sshll.u32 %s147_s0, 4  ;;  %s16_s14 = int_to_ptr.vmem [resolvable:$true] %s15_s14 }
   0x2   :  { %9 = vsyncpa [#allocation5], 0  ;;  %s24_s17 = sshll.u32 %s148_s1, 4  ;;  %s107_s18 = smov [#allocation2]   ;;  %s25_s17 = int_to_ptr.vmem [resolvable:$true] %s24_s17 }
   0x3   :  { %18 = dma.vmem_to_smem %s16_s14, 16, %s107_s18, [#allocation3]  }
   0x4   :  { %s108_s19 = smov [#allocation4]  }
   0x5   :  { %27 = dma.vmem_to_smem %s25_s17, 16, %s108_s19, [#allocation5]  }
   0x6   :  { %103 = dma.done.wait [#allocation3], 16  }
   0x7   :  { %104 = vsyncadd [#allocation3], 4294967280 }
   0x8   :  { %105 = dma.done.wait [#allocation5], 16  }
   0x9   :  { %106 = vsyncadd [#allocation5], 4294967280 }
   0xa   :  { %38 = sfence }
   0xb   :  { %s40_s20 = sld [smem:[#allocation2]]  ;;  %v39_v0 = vld [vmem:[%s149_s2] sm:$0x7] }
   0xc   :  { %s43_s21 = sld [smem:[#allocation4]]  ;;  %v56_v4 = vmul.f32 -4.905, %v39_v0 }
   0xd   :  { %s71_s22 = sld [smem:[#allocation2 + $0x1]] }
   0xe   :  { %s72_s0 = sld [smem:[#allocation4 + $0x1]] }
   0xf   :  { %s74_s25 = sld [smem:[#allocation2 + $0x2]] }
  0x10   :  { %s75_s1 = sld [smem:[#allocation4 + $0x2]] }
  0x11   :  { %v41_v1 = vstv %s40_s20 }
  0x12   :  { %v42_v2 = vmul.f32 %v41_v1, %v39_v0  ;;  %v44_v3 = vstv %s43_s21 }
  0x13   :  { %v48_v5 = vstv %s71_s22 }
  0x14   :  { %v45_v6 = vadd.f32 %v44_v3, %v42_v2  ;;  %v49_v7 = vmul.f32 %v48_v5, %v39_v0  ;;  %v51_v8 = vstv %s72_s0 }
  0x15   :  { %v57_v9 = vstv %s74_s25 }
  0x16   :  { %46 = vst [vmem:[%s150_s3] sm:$0x7] %v45_v6  ;;  %v52_v10 = vadd.f32 %v51_v8, %v49_v7  ;;  %v58_v11 = vadd.f32 %v57_v9, %v56_v4  ;;  %v61_v12 = vstv %s75_s1 }
  0x18   :  { %73 = vst [vmem:[%s150_s3 + $0x4] sm:$0x7] %v52_v10  ;;  %v59_v13 = vmul.f32 %v58_v11, %v39_v0 }
  0x1a   :  { %v62_v14 = vadd.f32 %v61_v12, %v59_v13 }
  0x1c   :  { %76 = vst [vmem:[%s150_s3 + $0x8] sm:$0x7] %v62_v14 }
  0x1d   :  { %69 = vsyncpa [#allocation3], 1 }
  0x1e   :  { %70 = vsyncpa [#allocation5], 1 }

</bundles_post_ra>
